<compile_context>
chip_gen: v5e
topology: v5e:2x2
jax: 0.10.0
libtpu: 0.0.40
codegen_flags: <defaults>
</compile_context>

<pallas_src>
import jax
import jax.numpy as jnp
from jax.experimental import pallas as pl
from jax.experimental.pallas import tpu as pltpu

LANES = 128
SUBLANES = 8
CHUNK_ROWS = 256                       # in-kernel sub-chunk: 256x128 f32 = 128 KiB live temps
BLOCK_BYTE_BUDGET = 4 * 1024 * 1024    # ~4 MiB per input block per grid step (dtype-scaled rows)
VMEM_LIMIT_BYTES = 32 * 1024 * 1024    # 2 in x 2 bufs x 4 MiB = 16 MiB pipeline + headroom


def _round_up(a, b):
    return ((a + b - 1) // b) * b


def _make_kernel(rows, tile_rows, chunk_rows, inner_steps):
    n_chunks = tile_rows // chunk_rows
    sub = chunk_rows // SUBLANES

    def kernel(x_ref, y_ref, acc_ref):
        o = pl.program_id(0)   # parallel partial-sum axis
        k = pl.program_id(1)   # reduction axis (output resident across it)

        @pl.when(k == 0)
        def _init():
            acc_ref[...] = jnp.zeros_like(acc_ref)

        def chunk_val(start):
            xv = x_ref[pl.ds(start, chunk_rows), :].astype(jnp.float32)
            yv = y_ref[pl.ds(start, chunk_rows), :].astype(jnp.float32)
            return jnp.exp(-(xv * yv))           # VPU mul + EUP exp

        t = o * inner_steps + k                  # UNclamped tile index
        rem = rows - t * tile_rows               # real rows left from this tile's start (int32-safe)

        @pl.when(rem >= tile_rows)               # interior tile: unmasked fast path
        def _full():
            acc = acc_ref[...]
            for c in range(n_chunks):            # static, fully unrolled
                v = chunk_val(c * chunk_rows)
                acc = acc + v.reshape(sub, SUBLANES, LANES).sum(axis=0)
            acc_ref[...] = acc

        @pl.when(jnp.logical_and(rem > 0, rem < tile_rows))   # ragged last tile (at most once/run)
        def _partial():
            row_ids = jax.lax.broadcasted_iota(jnp.int32, (chunk_rows, LANES), 0)
            acc = acc_ref[...]
            for c in range(n_chunks):
                v = chunk_val(c * chunk_rows)
                # Rows past `rem` are stale/garbage in the DMA buffer; select them away.
                v = jnp.where(row_ids < (rem - c * chunk_rows), v, 0.0)
                acc = acc + v.reshape(sub, SUBLANES, LANES).sum(axis=0)
            acc_ref[...] = acc

        # Overshoot tile (rem <= 0, only when an odd tile count is split two
        # ways): both branches skipped, nothing accumulated; the index_map
        # clamps the DMA to the last real tile.

    return kernel


def exponential_loss(x, y):
    """Computes mean(exp(-x*y)) with the bulk reduction done in a Pallas kernel."""
    assert x.shape == y.shape, "x and y must have the same shape"
    n_real = x.size
    out_dtype = jnp.result_type(x.dtype, y.dtype)
    if not jnp.issubdtype(out_dtype, jnp.floating):
        out_dtype = jnp.float32

    # Flatten in the NATIVE dtype (no f32 upcast pass over HBM); contiguous
    # ravel/reshape is free in XLA.
    xf = jnp.ravel(x)
    yf = jnp.ravel(y)

    # 128-aligned prefix goes through the kernel; the <128-element tail is a
    # tiny jnp reduction (no O(N) jnp.pad copy of the inputs).
    n_main = (n_real // LANES) * LANES
    total = jnp.float32(0.0)
    if n_main < n_real:
        xt = xf[n_main:].astype(jnp.float32)
        yt = yf[n_main:].astype(jnp.float32)
        total = total + jnp.sum(jnp.exp(-(xt * yt)))

    if n_main > 0:
        rows = n_main // LANES
        x2 = xf[:n_main].reshape(rows, LANES)
        y2 = yf[:n_main].reshape(rows, LANES)

        # Dtype-aware byte-budget tile; always a multiple of the in-kernel
        # sub-chunk so the body never needs a ragged static tail chunk.
        itemsize = max(jnp.dtype(x.dtype).itemsize, jnp.dtype(y.dtype).itemsize)
        budget_rows = max(
            CHUNK_ROWS,
            (BLOCK_BYTE_BUDGET // (LANES * itemsize)) // CHUNK_ROWS * CHUNK_ROWS)
        chunk_rows = CHUNK_ROWS if rows >= CHUNK_ROWS else _round_up(rows, SUBLANES)
        tile_rows = min(budget_rows, _round_up(rows, chunk_rows))
        n_tiles = pl.cdiv(rows, tile_rows)

        # Two independent output partials (one per v7x TensorCore via the
        # "parallel" axis) only when the split is waste-free or the input is
        # large enough that one clamped overshoot step is noise.
        n_outer = 2 if (n_tiles >= 2 and (n_tiles % 2 == 0 or n_tiles >= 16)) else 1
        inner = pl.cdiv(n_tiles, n_outer)

        def in_index(o, k):
            # Clamp the (at most one) overshoot step; its compute is skipped in-kernel.
            t = jnp.minimum(o * inner + k, n_tiles - 1)
            return (t, 0)

        partials = pl.pallas_call(
            _make_kernel(rows, tile_rows, chunk_rows, inner),
            out_shape=jax.ShapeDtypeStruct((n_outer, SUBLANES, LANES), jnp.float32),
            grid=(n_outer, inner),
            in_specs=[
                pl.BlockSpec((tile_rows, LANES), in_index),
                pl.BlockSpec((tile_rows, LANES), in_index),
            ],
            out_specs=pl.BlockSpec((None, SUBLANES, LANES), lambda o, k: (o, 0, 0)),
            compiler_params=pltpu.CompilerParams(
                dimension_semantics=("parallel", "arbitrary"),
                vmem_limit_bytes=VMEM_LIMIT_BYTES),
        )(x2, y2)

        total = total + jnp.sum(partials)

    return (total / jnp.float32(n_real)).astype(out_dtype)


if __name__ == "__main__":
    key = jax.random.PRNGKey(0)
    kx, ky = jax.random.split(key)
    # Shapes consistent with an NCHW conv-style input: batch=2, channels=4, 16x16
    x = jax.random.normal(kx, (2, 4, 16, 16), dtype=jnp.float32)
    y = jax.random.normal(ky, (2, 4, 16, 16), dtype=jnp.float32)

    loss_fn = jax.jit(exponential_loss)
    out = loss_fn(x, y)
    out = jax.block_until_ready(out)

    ref = jnp.mean(jnp.exp(-(x * y)))
    assert jnp.allclose(out, ref, rtol=1e-5, atol=1e-5), (out, ref)
    print("KERNEL_OK")
</pallas_src>

<mosaic_0001>
module attributes {stable_mosaic.version = 11 : i64} {
  func.func @kernel(%arg0: i32, %arg1: i32, %arg2: memref<16x128xf32, #tpu.memory_space<vmem>>, %arg3: memref<16x128xf32, #tpu.memory_space<vmem>>, %arg4: memref<1x8x128xf32, #tpu.memory_space<vmem>>) attributes {dimension_semantics = [#tpu.dimension_semantics<parallel>, #tpu.dimension_semantics<arbitrary>], iteration_bounds = array<i64: 1, 1>, scalar_prefetch = 0 : i64, scratch_operands = 0 : i64, tpu.core_type = #tpu.core_type<tc>, window_params = [{transform_indices = @transform_0, window_bounds = array<i64: 16, 128>}, {transform_indices = @transform_1, window_bounds = array<i64: 16, 128>}, {transform_indices = @transform_2, window_bounds = array<i64: 1, 8, 128>}]} {
    %c0_i32 = arith.constant 0 : i32
    %0 = arith.cmpi eq, %arg1, %c0_i32 : i32
    %1 = arith.extui %0 : i1 to i32
    %c0_i32_0 = arith.constant 0 : i32
    %2 = arith.cmpi ne, %1, %c0_i32_0 : i32
    scf.if %2 {
      %cst = arith.constant 0.000000e+00 : f32
      %15 = vector.broadcast %cst : f32 to vector<8x128xf32>
      %c0 = arith.constant 0 : index
      %c0_7 = arith.constant 0 : index
      %c0_8 = arith.constant 0 : index
      %16 = vector.load %arg4[%c0, %c0_7, %c0_8] : memref<1x8x128xf32, #tpu.memory_space<vmem>>, vector<1x8x128xf32>
      %17 = vector.shape_cast %16 : vector<1x8x128xf32> to vector<8x128xf32>
      %18 = vector.shape_cast %15 : vector<8x128xf32> to vector<1x8x128xf32>
      tpu.vector_store %arg4[%c0, %c0_7, %c0_8], %18 {strides = array<i32>} : memref<1x8x128xf32, #tpu.memory_space<vmem>>, vector<1x8x128xf32>,
    } else {
    }
    %c1_i32 = arith.constant 1 : i32
    %3 = arith.muli %arg0, %c1_i32 : i32
    %4 = arith.addi %3, %arg1 : i32
    %c16_i32 = arith.constant 16 : i32
    %5 = arith.muli %4, %c16_i32 : i32
    %c16_i32_1 = arith.constant 16 : i32
    %6 = arith.subi %c16_i32_1, %5 : i32
    %c16_i32_2 = arith.constant 16 : i32
    %7 = arith.cmpi sge, %6, %c16_i32_2 : i32
    %8 = arith.extui %7 : i1 to i32
    %c0_i32_3 = arith.constant 0 : i32
    %9 = arith.cmpi ne, %8, %c0_i32_3 : i32
    scf.if %9 {
      %c0 = arith.constant 0 : index
      %c0_7 = arith.constant 0 : index
      %c0_8 = arith.constant 0 : index
      %15 = vector.load %arg4[%c0, %c0_7, %c0_8] : memref<1x8x128xf32, #tpu.memory_space<vmem>>, vector<1x8x128xf32>
      %16 = vector.shape_cast %15 : vector<1x8x128xf32> to vector<8x128xf32>
      %c0_9 = arith.constant 0 : index
      %c0_10 = arith.constant 0 : index
      %17 = vector.load %arg2[%c0_9, %c0_10] : memref<16x128xf32, #tpu.memory_space<vmem>>, vector<16x128xf32>
      %c0_11 = arith.constant 0 : index
      %c0_12 = arith.constant 0 : index
      %18 = vector.load %arg3[%c0_11, %c0_12] : memref<16x128xf32, #tpu.memory_space<vmem>>, vector<16x128xf32>
      %19 = arith.mulf %17, %18 : vector<16x128xf32>
      %cst = arith.constant 0.000000e+00 : f32
      %20 = vector.broadcast %cst : f32 to vector<16x128xf32>
      %21 = arith.subf %20, %19 : vector<16x128xf32>
      %22 = math.exp %21 : vector<16x128xf32>
      %23 = vector.shape_cast %22 : vector<16x128xf32> to vector<2x8x128xf32>
      %cst_13 = arith.constant dense<0.000000e+00> : vector<8x128xf32>
      %24 = vector.multi_reduction <add>, %23, %cst_13 [0] : vector<2x8x128xf32> to vector<8x128xf32>
      %25 = arith.addf %16, %24 : vector<8x128xf32>
      %c0_14 = arith.constant 0 : index
      %c0_15 = arith.constant 0 : index
      %c0_16 = arith.constant 0 : index
      %26 = vector.load %arg4[%c0_14, %c0_15, %c0_16] : memref<1x8x128xf32, #tpu.memory_space<vmem>>, vector<1x8x128xf32>
      %27 = vector.shape_cast %26 : vector<1x8x128xf32> to vector<8x128xf32>
      %28 = vector.shape_cast %25 : vector<8x128xf32> to vector<1x8x128xf32>
      tpu.vector_store %arg4[%c0_14, %c0_15, %c0_16], %28 {strides = array<i32>} : memref<1x8x128xf32, #tpu.memory_space<vmem>>, vector<1x8x128xf32>,
    } else {
    }
    %c0_i32_4 = arith.constant 0 : i32
    %10 = arith.cmpi sgt, %6, %c0_i32_4 : i32
    %c16_i32_5 = arith.constant 16 : i32
    %11 = arith.cmpi slt, %6, %c16_i32_5 : i32
    %12 = arith.andi %10, %11 : i1
    %13 = arith.extui %12 : i1 to i32
    %c0_i32_6 = arith.constant 0 : i32
    %14 = arith.cmpi ne, %13, %c0_i32_6 : i32
    scf.if %14 {
      %15 = tpu.iota {dimensions = array<i32: 0>} : vector<16x128xi32>
      %c0 = arith.constant 0 : index
      %c0_7 = arith.constant 0 : index
      %c0_8 = arith.constant 0 : index
      %16 = vector.load %arg4[%c0, %c0_7, %c0_8] : memref<1x8x128xf32, #tpu.memory_space<vmem>>, vector<1x8x128xf32>
      %17 = vector.shape_cast %16 : vector<1x8x128xf32> to vector<8x128xf32>
      %c0_9 = arith.constant 0 : index
      %c0_10 = arith.constant 0 : index
      %18 = vector.load %arg2[%c0_9, %c0_10] : memref<16x128xf32, #tpu.memory_space<vmem>>, vector<16x128xf32>
      %c0_11 = arith.constant 0 : index
      %c0_12 = arith.constant 0 : index
      %19 = vector.load %arg3[%c0_11, %c0_12] : memref<16x128xf32, #tpu.memory_space<vmem>>, vector<16x128xf32>
      %20 = arith.mulf %18, %19 : vector<16x128xf32>
      %cst = arith.constant 0.000000e+00 : f32
      %21 = vector.broadcast %cst : f32 to vector<16x128xf32>
      %22 = arith.subf %21, %20 : vector<16x128xf32>
      %23 = math.exp %22 : vector<16x128xf32>
      %c0_i32_13 = arith.constant 0 : i32
      %24 = arith.subi %6, %c0_i32_13 : i32
      %25 = vector.broadcast %24 : i32 to vector<16x128xi32>
      %26 = arith.cmpi slt, %15, %25 : vector<16x128xi32>
      %cst_14 = arith.constant 0.000000e+00 : f32
      %27 = vector.broadcast %cst_14 : f32 to vector<16x128xf32>
      %28 = arith.select %26, %23, %27 : vector<16x128xi1>, vector<16x128xf32>
      %29 = vector.shape_cast %28 : vector<16x128xf32> to vector<2x8x128xf32>
      %cst_15 = arith.constant dense<0.000000e+00> : vector<8x128xf32>
      %30 = vector.multi_reduction <add>, %29, %cst_15 [0] : vector<2x8x128xf32> to vector<8x128xf32>
      %31 = arith.addf %17, %30 : vector<8x128xf32>
      %c0_16 = arith.constant 0 : index
      %c0_17 = arith.constant 0 : index
      %c0_18 = arith.constant 0 : index
      %32 = vector.load %arg4[%c0_16, %c0_17, %c0_18] : memref<1x8x128xf32, #tpu.memory_space<vmem>>, vector<1x8x128xf32>
      %33 = vector.shape_cast %32 : vector<1x8x128xf32> to vector<8x128xf32>
      %34 = vector.shape_cast %31 : vector<8x128xf32> to vector<1x8x128xf32>
      tpu.vector_store %arg4[%c0_16, %c0_17, %c0_18], %34 {strides = array<i32>} : memref<1x8x128xf32, #tpu.memory_space<vmem>>, vector<1x8x128xf32>,
    } else {
    }
    return
  }
  func.func @transform_0(%arg0: i32, %arg1: i32) -> (i32, i32) {
    %c1_i32 = arith.constant 1 : i32
    %0 = arith.muli %arg0, %c1_i32 : i32
    %1 = arith.addi %0, %arg1 : i32
    %c0_i32 = arith.constant 0 : i32
    %2 = arith.minsi %1, %c0_i32 : i32
    %c0_i32_0 = arith.constant 0 : i32
    %c0_i32_1 = arith.constant 0 : i32
    return %2, %c0_i32_0 : i32, i32
  }
  func.func @transform_1(%arg0: i32, %arg1: i32) -> (i32, i32) {
    %c1_i32 = arith.constant 1 : i32
    %0 = arith.muli %arg0, %c1_i32 : i32
    %1 = arith.addi %0, %arg1 : i32
    %c0_i32 = arith.constant 0 : i32
    %2 = arith.minsi %1, %c0_i32 : i32
    %c0_i32_0 = arith.constant 0 : i32
    %c0_i32_1 = arith.constant 0 : i32
    return %2, %c0_i32_0 : i32, i32
  }
  func.func @transform_2(%arg0: i32, %arg1: i32) -> (i32, i32, i32) {
    %c0_i32 = arith.constant 0 : i32
    %c0_i32_0 = arith.constant 0 : i32
    %c0_i32_1 = arith.constant 0 : i32
    return %arg0, %c0_i32, %c0_i32_0 : i32, i32, i32
  }
}

</mosaic_0001>

<bundles_post_ra>
// kernel: exponential_loss.1
= control target key start
LH: loop header
LB: loop body
LE: loop exit
PB: predicated region body
PF: predicated region fallthrough
CT: control target
= control target key end

     0   :  { %s184_s0 = inlined_call_operand.vmem [shape: f32[16,128], index: 0, kind: input, shape index: {}]   ;;  %s185_s1 = inlined_call_operand.vmem [shape: f32[16,128], index: 1, kind: input, shape index: {}]   ;;  %s186_s2 = inlined_call_operand.vmem [shape: f32[1,8,128], index: 2, kind: output, shape index: {}]  }
   0x1   :  { %v88_v0 = vld [vmem:[%s184_s0] sm:$0xff]  ;;  %v89_v1 = vld [vmem:[%s184_s0 + $0x8] sm:$0xff] }
   0x2   :  { %v90_v2 = vld [vmem:[%s185_s1] sm:$0xff]  ;;  %v91_v3 = vld [vmem:[%s185_s1 + $0x8] sm:$0xff] }
   0x3   :  { %v92_v4 = vmul.f32 %v90_v2, %v88_v0  ;;  %v93_v5 = vmul.f32 %v91_v3, %v89_v1 }
   0x5   :  { %v94_v6 = vsub.f32 0.0, %v92_v4  ;;  %v95_v7 = vsub.f32 0.0, %v93_v5 }
   0x7   :  { %v96_v8 = vmul.f32 1.442695, %v94_v6  ;;  %v98_v9 = vmul.f32 1.442695, %v95_v7 }
   0x9   :  { %150 = vpow2.f32 %v96_v8 }
   0xa   :  { %152 = vpow2.f32 %v98_v9 }
   0xf   :  { %v151_v10 = vpop.eup %150 }
  0x10   :  { %v153_v11 = vpop.eup %152 }
  0x11   :  { %v100_v12 = vadd.f32 %v153_v11, %v151_v10 }
  0x13   :  { %102 = vst [vmem:[%s186_s2] sm:$0xff] %v100_v12 }

</bundles_post_ra>
